<compile_context>
chip_gen: v7x
topology: tpu7x:2x2x1
jax: 0.10.0
libtpu: 0.0.40
codegen_flags: <defaults>
</compile_context>

<pallas_src>
import functools

import jax
import jax.numpy as jnp
from jax.experimental import pallas as pl
from jax.experimental.pallas import tpu as pltpu

_LANE = 128


# --------------------------- broadcast helpers ------------------------------ #

def _bcast_lane(v):
    # (tile_n, 1, 1) per-sample constant -> (tile_n, 1, 128): lane broadcast
    # done exactly once per constant (JAX does not CSE broadcast_in_dim).
    return jnp.broadcast_to(v, v.shape[:-1] + (_LANE,))


def _bcast_id(v):
    return v


# --------------------------- quantization math ------------------------------ #

def _ideal_quant(x, rr, *, scale, inv_scale, fast, bcast):
    # torch: floor(x / rr * 2^b) * rr / 2^b   (no rr==0 guard, matching torch)
    rr_out = bcast(rr * jnp.float32(inv_scale))            # exact: /2^b == *2^-b
    if fast:
        # Hoisted per-sample divide (one per-element multiply instead of a
        # divide); may differ from torch by 1 ulp at floor() boundaries.
        q = jnp.floor(x * bcast(jnp.float32(scale) / rr))
    else:
        q = jnp.floor((x / bcast(rr)) * jnp.float32(scale))
    return q * rr_out


def _ss_cco_quant(x, rr, *, adc_func, p0, p1, p2, scale, inv_scale, fast, bcast):
    rr = jnp.where(rr == jnp.float32(0.0), jnp.float32(1.0), rr)
    if fast:
        r = x * bcast(jnp.float32(p1) / rr)                 # hoisted divide
    else:
        r = (x / bcast(rr)) * jnp.float32(p1)               # torch op order
    r = jnp.clip(r, jnp.float32(p0), jnp.float32(p1))
    # TODO(synk): the torch module round-trips through the CPU with an
    # arbitrary host callable (adc_func); only a JAX-traceable adc_func is
    # representable inside a TPU kernel.
    r = adc_func(r)
    if fast:
        q = jnp.floor(r * jnp.float32(scale / p2))           # single multiply
    else:
        q = jnp.floor((r * jnp.float32(scale)) / jnp.float32(p2))  # torch order
    return (q * bcast(rr)) * jnp.float32(inv_scale)


# -------------------------------- kernels ---------------------------------- #

def _adc_kernel_fused(x_ref, o_ref, *, quant):
    # Per-sample max from a native-dtype read (half the vregs for bf16); the
    # block is re-read for the quant, so no full f32 copy of the input stays
    # live across the reduction (VMEM-pressure item from the review).
    xm = x_ref[...]
    rr = xm
    for ax in range(xm.ndim - 1, 0, -1):
        rr = jnp.max(rr, axis=ax, keepdims=True)
    rr = rr.astype(jnp.float32)
    x = x_ref[...].astype(jnp.float32)
    o_ref[...] = quant(x, rr).astype(o_ref.dtype)


def _adc_kernel_split(rr_ref, x_ref, o_ref, *, quant):
    # rr_ref: (N,) f32 per-sample max in SMEM (scalar prefetch).
    # x_ref:  (1, tile_r, 128) block of one sample.
    rr = rr_ref[pl.program_id(0)]
    x = x_ref[...].astype(jnp.float32)
    o_ref[...] = quant(x, rr).astype(o_ref.dtype)


# ------------------------------- wrapper ------------------------------------ #

class ADC:
    """JAX/Pallas equivalent of the PyTorch ADC module (forward only)."""

    def __init__(self, adc, adc_bits, adc_func=None, adc_params=None,
                 max_block_bytes=4 * 1024 * 1024, fast_divide=False):
        self.adc = adc
        self.adc_bits = adc_bits
        self.adc_func = adc_func
        self.adc_params = adc_params
        self.max_block_bytes = int(max_block_bytes)   # per-block byte budget
        self.fast_divide = bool(fast_divide)

    # ---------------------------------------------------------------- utils --
    def _compiler_params(self, sem):
        # 48 MiB scoped VMEM: below v7x's 64 MiB physical, ample on v5e/v6e.
        return pltpu.CompilerParams(dimension_semantics=sem,
                                    vmem_limit_bytes=48 * 1024 * 1024)

    def _quant_base(self):
        scale = float(2 ** self.adc_bits)
        inv_scale = float(2.0 ** (-self.adc_bits))
        if self.adc == "ideal":
            return functools.partial(_ideal_quant, scale=scale,
                                     inv_scale=inv_scale, fast=self.fast_divide)
        p0, p1, p2 = (float(self.adc_params[0]), float(self.adc_params[1]),
                      float(self.adc_params[2]))
        return functools.partial(_ss_cco_quant, adc_func=self.adc_func,
                                 p0=p0, p1=p1, p2=p2, scale=scale,
                                 inv_scale=inv_scale, fast=self.fast_divide)

    # ------------------------------------------------------------ fused 3-D --
    def _run_fused3d(self, x3, quant_base):
        n, r_rows, _ = x3.shape
        sample_bytes = r_rows * _LANE * x3.dtype.itemsize
        tile_n = max(1, min(n, self.max_block_bytes // max(1, sample_bytes)))
        if n > 1:
            tile_n = max(1, min(tile_n, pl.cdiv(n, 2)))   # guarantee >= 2 steps
        quant = functools.partial(quant_base, bcast=_bcast_lane)
        return pl.pallas_call(
            functools.partial(_adc_kernel_fused, quant=quant),
            out_shape=jax.ShapeDtypeStruct(x3.shape, x3.dtype),
            grid_spec=pltpu.PrefetchScalarGridSpec(
                num_scalar_prefetch=0,
                grid=(pl.cdiv(n, tile_n),),
                in_specs=[pl.BlockSpec((tile_n, r_rows, _LANE),
                                       lambda i: (i, 0, 0))],
                out_specs=pl.BlockSpec((tile_n, r_rows, _LANE),
                                       lambda i: (i, 0, 0))),
            compiler_params=self._compiler_params(("parallel",)),
        )(x3)

    # ------------------------------------------------------------ fused 2-D --
    def _run_fused2d(self, x2, quant_base, budget_rows):
        # Unaligned F: block last dim == full array dim (legal); no pad/slice.
        n, f = x2.shape
        if n <= 8:
            tile_n = n                     # equal to full dim -> legal sublane
        else:
            tile_n = min(budget_rows, pl.cdiv(n, 2))
            tile_n = max(8, (tile_n // 8) * 8)
        quant = functools.partial(quant_base, bcast=_bcast_id)
        return pl.pallas_call(
            functools.partial(_adc_kernel_fused, quant=quant),
            out_shape=jax.ShapeDtypeStruct((n, f), x2.dtype),
            grid_spec=pltpu.PrefetchScalarGridSpec(
                num_scalar_prefetch=0,
                grid=(pl.cdiv(n, tile_n),),
                in_specs=[pl.BlockSpec((tile_n, f), lambda i: (i, 0))],
                out_specs=pl.BlockSpec((tile_n, f), lambda i: (i, 0))),
            compiler_params=self._compiler_params(("parallel",)),
        )(x2)

    # -------------------------------------------------------------- split ----
    def _run_split(self, x3, rr, quant_base):
        # Per-sample max precomputed and passed via SMEM scalar prefetch.
        n, r_rows, _ = x3.shape
        row_bytes = _LANE * x3.dtype.itemsize
        tile_r = max(1, self.max_block_bytes // row_bytes)
        if n == 1:
            tile_r = min(tile_r, pl.cdiv(r_rows, 2))      # >= 2 grid steps
        if tile_r >= r_rows:
            tile_r = r_rows
        else:
            tile_r = min(r_rows, max(32, (tile_r // 32) * 32))  # layout-safe
        quant = functools.partial(quant_base, bcast=_bcast_id)
        return pl.pallas_call(
            functools.partial(_adc_kernel_split, quant=quant),
            out_shape=jax.ShapeDtypeStruct(x3.shape, x3.dtype),
            grid_spec=pltpu.PrefetchScalarGridSpec(
                num_scalar_prefetch=1,
                grid=(n, pl.cdiv(r_rows, tile_r)),
                in_specs=[pl.BlockSpec((1, tile_r, _LANE),
                                       lambda i, j, rr_s: (i, j, 0))],
                out_specs=pl.BlockSpec((1, tile_r, _LANE),
                                       lambda i, j, rr_s: (i, j, 0))),
            compiler_params=self._compiler_params(("parallel", "parallel")),
        )(rr.astype(jnp.float32), x3)

    # ---------------------------------------------------------------- call ---
    def __call__(self, x):
        if self.adc not in ("ss", "cco", "ideal"):
            return x

        n, c, h, w = x.shape
        f = c * h * w
        quant_base = self._quant_base()
        itemsize = x.dtype.itemsize
        budget = self.max_block_bytes

        if f % _LANE == 0:
            # Lane-aligned F: free (N, F//128, 128) re-layout in HBM.
            r_rows = f // _LANE
            x3 = x.reshape(n, r_rows, _LANE)
            fits = f * itemsize <= budget
            # n == 1 would give a 1-step grid in the fused path (no megacore
            # sharding, no DMA/compute overlap) -> use the split path instead.
            force_split = (n == 1 and r_rows >= 64)
            if fits and not force_split:
                out3 = self._run_fused3d(x3, quant_base)
            else:
                rr = jnp.max(x3.reshape(n, f), axis=1)
                out3 = self._run_split(x3, rr, quant_base)
            return out3.reshape(n, c, h, w)

        # F not a multiple of 128: 2-D (N, F) layout, block last dim == F.
        x2 = x.reshape(n, f)
        budget_rows = max(1, budget // max(1, f * itemsize))
        if budget_rows >= min(8, n):
            out2 = self._run_fused2d(x2, quant_base, budget_rows)
            return out2.reshape(n, c, h, w)

        # Rare corner (huge samples AND unaligned F): one zero-pad pass + split
        # (per-sample max computed from the unpadded data, so padding is inert).
        rr = jnp.max(x2, axis=1)
        r_rows = pl.cdiv(f, _LANE)
        f_pad = r_rows * _LANE
        x3 = jnp.pad(x2, ((0, 0), (0, f_pad - f))).reshape(n, r_rows, _LANE)
        out3 = self._run_split(x3, rr, quant_base)
        return out3.reshape(n, f_pad)[:, :f].reshape(n, c, h, w)


# ------------------------- pure-JAX references ------------------------------ #

def _ref_ideal(x, adc_bits):
    n = x.shape[0]
    rr = jnp.max(x.reshape(n, -1), axis=1).reshape(n, 1, 1, 1)
    s = 2.0 ** adc_bits
    return jnp.floor(x / rr * s) * rr / s


def _ref_ss(x, adc_bits, adc_func, params):
    n = x.shape[0]
    rr = jnp.max(x.reshape(n, -1), axis=1).reshape(n, 1, 1, 1)
    rr = jnp.where(rr == 0.0, 1.0, rr)
    s = 2.0 ** adc_bits
    r = jnp.clip(x / rr * params[1], params[0], params[1])
    r = adc_func(r)
    r = jnp.floor(r * s / params[2])
    return r * rr / s


# ---------------------------------- main ------------------------------------ #

if __name__ == "__main__":
    key = jax.random.PRNGKey(0)
    k1, k2, k3 = jax.random.split(key, 3)

    # Small NCHW activations: batch=2, channels=4, 16x16 spatial -> F = 1024.
    x = jax.random.uniform(k1, (2, 4, 16, 16), dtype=jnp.float32)
    rrm = jnp.max(x.reshape(2, -1), axis=1).reshape(2, 1, 1, 1)

    # --- ideal ADC, exact divide (fused 3-D path, 2 grid steps) ---
    adc_ideal = ADC(adc="ideal", adc_bits=4)
    y_ideal = jax.block_until_ready(adc_ideal(x))
    assert jnp.allclose(y_ideal, _ref_ideal(x, 4), atol=1e-6), "ideal mismatch"

    # --- ideal ADC with the hoisted per-sample reciprocal (fast_divide) ---
    adc_fast = ADC(adc="ideal", adc_bits=4, fast_divide=True)
    y_fast = jax.block_until_ready(adc_fast(x))
    ref_fast = jnp.floor(x * (16.0 / rrm)) * (rrm / 16.0)
    assert jnp.allclose(y_fast, ref_fast, atol=1e-6), "ideal fast mismatch"

    # --- ss ADC with a JAX-traceable stand-in transfer curve ---
    adc_func = jnp.tanh
    adc_params = (0.0, 1.0, 1.0)
    adc_ss = ADC(adc="ss", adc_bits=4, adc_func=adc_func, adc_params=adc_params)
    y_ss = jax.block_until_ready(adc_ss(x))
    ref_ss = _ref_ss(x, 4, adc_func, adc_params)
    diff = jnp.abs(y_ss - ref_ss)
    lsb = rrm / 16.0
    # Allow a tiny number of 1-LSB flips (in-kernel tanh vs XLA tanh can differ
    # by an ulp exactly at a floor boundary); anything larger is a real bug.
    assert bool(jnp.all(diff <= lsb + 1e-6)), "ss mismatch (>1 LSB)"
    assert float(jnp.mean(diff <= 1e-6)) > 0.99, "ss mismatch (too many flips)"

    # --- split path (sample bigger than the block budget), bf16 input,
    #     per-sample max delivered via SMEM scalar prefetch ---
    xb = jax.random.uniform(k2, (2, 8, 32, 32),
                            dtype=jnp.float32).astype(jnp.bfloat16)
    adc_split = ADC(adc="ideal", adc_bits=4, max_block_bytes=8 * _LANE * 2)
    y_split = jax.block_until_ready(adc_split(xb))
    ref_split = _ref_ideal(xb.astype(jnp.float32), 4).astype(jnp.bfloat16)
    assert y_split.dtype == jnp.bfloat16
    assert jnp.allclose(y_split.astype(jnp.float32),
                        ref_split.astype(jnp.float32), atol=1e-6), "split mismatch"

    # --- n == 1 routed to the split path so the grid still has >= 2 steps ---
    x1 = jax.random.uniform(k3, (1, 8, 32, 32), dtype=jnp.float32)
    adc_one = ADC(adc="ideal", adc_bits=4)
    y_one = jax.block_until_ready(adc_one(x1))
    assert jnp.allclose(y_one, _ref_ideal(x1, 4), atol=1e-6), "n==1 mismatch"

    # --- F % 128 != 0: pad-free 2-D layout (block last dim == full dim) ---
    adc_un = ADC(adc="ideal", adc_bits=4)
    xu = jax.random.uniform(k1, (2, 3, 5, 5), dtype=jnp.float32)
    y_un = jax.block_until_ready(adc_un(xu))
    assert jnp.allclose(y_un, _ref_ideal(xu, 4), atol=1e-6), "unaligned mismatch"

    xu2 = jax.random.uniform(k2, (10, 3, 5, 5), dtype=jnp.float32)
    y_un2 = jax.block_until_ready(adc_un(xu2))
    assert jnp.allclose(y_un2, _ref_ideal(xu2, 4),
                        atol=1e-6), "unaligned batch mismatch"

    # --- passthrough ---
    adc_none = ADC(adc="none", adc_bits=4)
    assert jnp.array_equal(adc_none(x), x), "passthrough mismatch"

    print("KERNEL_OK")
</pallas_src>

<mosaic_0001>
module attributes {stable_mosaic.version = 11 : i64} {
  func.func @_adc_kernel_fused(%arg0: i32, %arg1: memref<1x8x128xf32, #tpu.memory_space<vmem>>, %arg2: memref<1x8x128xf32, #tpu.memory_space<vmem>>) attributes {dimension_semantics = [#tpu.dimension_semantics<parallel>], iteration_bounds = array<i64: 2>, scalar_prefetch = 0 : i64, scratch_operands = 0 : i64, tpu.core_type = #tpu.core_type<tc>, window_params = [{transform_indices = @transform_0, window_bounds = array<i64: 1, 8, 128>}, {transform_indices = @transform_1, window_bounds = array<i64: 1, 8, 128>}]} {
    %c0 = arith.constant 0 : index
    %c0_0 = arith.constant 0 : index
    %c0_1 = arith.constant 0 : index
    %0 = vector.load %arg1[%c0, %c0_0, %c0_1] : memref<1x8x128xf32, #tpu.memory_space<vmem>>, vector<1x8x128xf32>
    %cst = arith.constant dense<0xFF800000> : vector<1x8xf32>
    %1 = vector.multi_reduction <maximumf>, %0, %cst [2] : vector<1x8x128xf32> to vector<1x8xf32>
    %2 = vector.shape_cast %1 : vector<1x8xf32> to vector<1x8x1xf32>
    %cst_2 = arith.constant dense<0xFF800000> : vector<1x1xf32>
    %3 = vector.multi_reduction <maximumf>, %2, %cst_2 [1] : vector<1x8x1xf32> to vector<1x1xf32>
    %4 = vector.shape_cast %3 : vector<1x1xf32> to vector<1x1x1xf32>
    %c0_3 = arith.constant 0 : index
    %c0_4 = arith.constant 0 : index
    %c0_5 = arith.constant 0 : index
    %5 = vector.load %arg1[%c0_3, %c0_4, %c0_5] : memref<1x8x128xf32, #tpu.memory_space<vmem>>, vector<1x8x128xf32>
    %cst_6 = arith.constant 6.250000e-02 : f32
    %6 = vector.broadcast %cst_6 : f32 to vector<1x1x1xf32>
    %7 = arith.mulf %4, %6 : vector<1x1x1xf32>
    %8 = vector.shape_cast %7 : vector<1x1x1xf32> to vector<1x1x1xf32>
    %9 = vector.broadcast %8 : vector<1x1x1xf32> to vector<1x1x128xf32>
    %10 = vector.shape_cast %4 : vector<1x1x1xf32> to vector<1x1x1xf32>
    %11 = vector.broadcast %10 : vector<1x1x1xf32> to vector<1x1x128xf32>
    %12 = vector.broadcast %11 : vector<1x1x128xf32> to vector<1x8x128xf32>
    %13 = arith.divf %5, %12 : vector<1x8x128xf32>
    %cst_7 = arith.constant 1.600000e+01 : f32
    %14 = vector.broadcast %cst_7 : f32 to vector<1x8x128xf32>
    %15 = arith.mulf %13, %14 : vector<1x8x128xf32>
    %16 = math.floor %15 : vector<1x8x128xf32>
    %17 = vector.broadcast %9 : vector<1x1x128xf32> to vector<1x8x128xf32>
    %18 = arith.mulf %16, %17 : vector<1x8x128xf32>
    %c0_8 = arith.constant 0 : index
    %c0_9 = arith.constant 0 : index
    %c0_10 = arith.constant 0 : index
    %19 = vector.load %arg2[%c0_8, %c0_9, %c0_10] : memref<1x8x128xf32, #tpu.memory_space<vmem>>, vector<1x8x128xf32>
    tpu.vector_store %arg2[%c0_8, %c0_9, %c0_10], %18 {strides = array<i32>} : memref<1x8x128xf32, #tpu.memory_space<vmem>>, vector<1x8x128xf32>,
    return
  }
  func.func @transform_0(%arg0: i32) -> (i32, i32, i32) {
    %c0_i32 = arith.constant 0 : i32
    %c0_i32_0 = arith.constant 0 : i32
    %c0_i32_1 = arith.constant 0 : i32
    return %arg0, %c0_i32, %c0_i32_0 : i32, i32, i32
  }
  func.func @transform_1(%arg0: i32) -> (i32, i32, i32) {
    %c0_i32 = arith.constant 0 : i32
    %c0_i32_0 = arith.constant 0 : i32
    %c0_i32_1 = arith.constant 0 : i32
    return %arg0, %c0_i32, %c0_i32_0 : i32, i32, i32
  }
}

</mosaic_0001>

<bundles_post_ra>
// kernel: tpu_custom_call.1
= control target key start
LH: loop header
LB: loop body
LE: loop exit
PB: predicated region body
PF: predicated region fallthrough
CT: control target
= control target key end

     0   :  { %6 = vsyncpa [#allocation3], 0  ;;  %s563_s0 = inlined_call_operand.hbm [shape: f32[2,8,128], index: 0, kind: input, shape index: {}]   ;;  %s564_s1 = inlined_call_operand.hbm [shape: f32[2,8,128], index: 1, kind: output, shape index: {}]  }
   0x1   :  { %8 = vsyncpa [#allocation3 + $0x1], 0 }
   0x2   :  { %9 = vsyncpa [#allocation4], 0 }
   0x3   :  { %11 = vsyncpa [#allocation4 + $0x1], 0  ;;  %s402_s6 = smov 0   ;;  %s404_s7 = smov 0  }
   0x4   :  { %s406_s8 = smov 0   ;;  %s408_s9 = smov 0  }
   0x5 LB: > { %s423_s10 = sadd.s32 4294967295, %s388_s9   ;;  %s232_s11 = sadd.s32 4294967294, %s388_s9   ;;  %s388_s9 = sphi %s408_s9, %s579_s9   ;;  %s384_s8 = sphi %s406_s8, %s578_s8   ;;  %s380_s7 = sphi %s404_s7, %s577_s7   ;;  %s376_s6 = sphi %s402_s6, %s576_s6  }
   0x6   : > { %s427_s12 = sadd.s32 1, %s388_s9   ;;  %s24_s13 = sadd.s32 1, %s384_s8 }
   0x7   : > { %s21_s14 = ssub.s32 %s388_s9, %s427_s12  ;;  %p31_p0 = scmp.ne.s32.totalorder %s384_s8, %s380_s7 }
   0x8   : > { %p22_p1 = scmp.eq.s32.totalorder %s21_s14, 0  ;;  %p32_p2 = scmp.eq.s32.totalorder %s388_s9, 0 }
   0x9   : > { %p37_p3 = scmp.ne.s32.totalorder %s380_s7, %s376_s6  ;;  %p38_p4 = scmp.eq.s32.totalorder %s423_s10, 0 }
   0xa   : > { %s439_s15 = scalar_select %p22_p1, %s384_s8, %s24_s13  }
   0xb   : > { %p441_p5 = por %p32_p2, %p31_p0  ;;  %p445_p6 = por %p38_p4, %p37_p3 }
   0xc   : > { %p61_p7 = scmp.eq.s32.totalorder %s423_s10, 1  ;;  %p67_p8 = scmp.eq.s32.totalorder %s232_s11, 1 }
   0xd   : > { %p256_p10 = scmp.lt.s32.totalorder %s388_s9, 2  ;;  %s87_s20 = sand.u32 1, %s384_s8  }
   0xe   : > { %p452_p11 = por %p61_p7, %p31_p0  ;;  %p456_p12 = por %p67_p8, %p37_p3 }
   0xf   : > { %s236_s21 = sshll.u32 %s388_s9, 7  ;;  %s235_s22 = sshll.u32 %s87_s20, 3 }
  0x10   : > { %s568_s18 = scalar_select %p452_p11, 1, 0 }
  0x11   : > { %s569_s19 = scalar_select %p456_p12, 1, 0 }
  0x12   : > { %s465_s25 = scalar_lea.hbm %s563_s0, %s236_s21  ;;  %s91_s26 = scalar_lea.vmem [#allocation2], %s235_s22 }
  0x13   : > { %s98_s27 = sshll.u32 %s91_s26, 4  ;;  %p469_p13 = pnand %p256_p10, %p441_p5  ;;  %s473_s27 = int_to_ptr.vmem [resolvable:$true] %s98_s27 }
  0x14   : > { %s88_s29 = scalar_lea.sflag [#allocation3], %s87_s20  ;;  %s292_s30 = scalar_lea.hbm %s465_s25, 128 }
  0x15   : > { %p293_p2 = scmp.ne.s32.totalorder %s465_s25, %s292_s30  ;;  %p294_p3 = pneg %p469_p13 }
  0x16   : > { %s297_s4 = scalar_lea.hbm %s563_s0, 256  ;;  %p298_p5 = scmp.lt.u32.totalorder %s465_s25, %s563_s0 }
  0x17   : > { %p295_p4 = pnand %p294_p3, %p293_p2  ;;  %p299_p8 = scmp.lt.u32.totalorder %s297_s4, %s292_s30 }
  0x18   : > { %p301_p9 = scmp.lt.u32.totalorder %s292_s30, %s465_s25 }
  0x19   : > { %p296_p7 = pneg %p295_p4  ;;  %p300_p10 = por %p299_p8, %p298_p5 }
  0x1b   : > { %p302_p0 = por %p301_p9, %p300_p10 }
  0x1d   : > { %p303_p1 = pnand %p302_p0, %p296_p7 }
  0x1f   : > { %306 = shalt.err (!%p303_p1)
}
  0x20   : > { %s307_s13 = scalar_lea.vmem %s473_s27, 128  ;;  %s390_s14 = smov [#allocation2]  }
  0x21   : > { %p308_p2 = scmp.ne.s32.totalorder %s473_s27, %s307_s13  ;;  %s312_s16 = sshll.u32 %s390_s14, 4  ;;  %s313_s16 = int_to_ptr.vmem [resolvable:$false] %s312_s16 }
  0x22   : > { %s314_s20 = scalar_lea.vmem %s313_s16, 256  ;;  %p315_p11 = scmp.lt.s32.totalorder %s473_s27, %s313_s16 }
  0x23   : > { %p310_p4 = pnand %p308_p2, %p294_p3  ;;  %p316_p5 = scmp.lt.s32.totalorder %s314_s20, %s307_s13 }
  0x25   : > { %p311_p12 = pneg %p310_p4  ;;  %p317_p8 = por %p316_p5, %p315_p11 }
  0x27   : > { %p318_p9 = pnand %p317_p8, %p311_p12 }
  0x29   : > { %321 = shalt.err (!%p318_p9)
}
  0x2a   : > { %251 = dma.hbm_to_vmem [thread:$0]  (!%p469_p13), %s465_s25, 128, %s473_s27, %s88_s29  }
  0x2b   : > { %p571_p0 = scmp.lt.s32.totalorder %s388_s9, 3  ;;  %p572_p1 = scmp.ge.s32.totalorder %s388_s9, 1 }
  0x2d   : > { %p104_p3 = pnand %p572_p1, %p571_p0 }
  0x2e   : > { %s507_s21 = sand.u32 (!%p104_p3), 1, %s380_s7  }
  0x2f   : > { %107 = sbr.rel (%p104_p3) target bundleno = 243 (0xf3), region = 24  ;;  %s238_s22 = sshll.u32 (!%p104_p3), %s507_s21, 3 }
  0x30   : > { %s110_s23 = scalar_lea.sflag (!%p104_p3), [#allocation3], %s507_s21  ;;  %s113_s24 = scalar_lea.vmem (!%p104_p3), [#allocation2], %s238_s22 }
  0x36   : > { %367 = dma.done.wait (%p445_p6), %s110_s23, 128  }
  0x37   : > { %369 = vsyncadd (%p445_p6), %s110_s23, 4294967168  ;;  %v132_v0 = vld [vmem:[%s113_s24] sm:$0xff]  ;;  %s241_s25 = sshll.u32 %s423_s10, 7  ;;  %s131_s26 = scalar_lea.vmem [#allocation5], %s238_s22 }
  0x38   : > { %133 = vmax.xlane.f32.xlu0 %v132_v0  ;;  %s162_s17 = sshll.u32 %s131_s26, 4  ;;  %s519_s29 = scalar_lea.hbm %s564_s1, %s241_s25  ;;  %s521_s17 = int_to_ptr.vmem [resolvable:$true] %s162_s17 }
  0x39   : > { %s149_s30 = scalar_lea.sflag [#allocation4], %s507_s21  ;;  %s322_s2 = scalar_lea.vmem %s521_s17, 128 }
  0x3a   : > { %p323_p6 = scmp.ne.s32.totalorder %s521_s17, %s322_s2  ;;  %p573_p11 = scmp.ne.s32.totalorder %s568_s18, 0 }
  0x3b   : > { %s391_s10 = smov [#allocation5]  }
  0x3c   : > { %p324_p12 = pnand %p323_p6, %p573_p11  ;;  %s326_s3 = sshll.u32 %s391_s10, 4  ;;  %s327_s3 = int_to_ptr.vmem [resolvable:$false] %s326_s3 }
  0x3d   : > { %s328_s4 = scalar_lea.vmem %s327_s3, 256  ;;  %p329_p7 = scmp.lt.s32.totalorder %s521_s17, %s327_s3 }
  0x3e   : > { %p325_p13 = pneg %p324_p12  ;;  %p330_p10 = scmp.lt.s32.totalorder %s328_s4, %s322_s2 }
  0x40   : > { %p331_p2 = por %p330_p10, %p329_p7 }
  0x42   : > { %p332_p4 = pnand %p331_p2, %p325_p13 }
  0xc5   : > { %v134_v1 = vpop.xlane.xlu0 %133 }
  0xc6   : > { %v135_v2 = vrot.slane %v134_v1, 4 }
  0xc8   : > { %v136_v3 = vmax.f32 %v134_v1, %v135_v2 }
  0xca   : > { %v137_v4 = vrot.slane %v136_v3, 2 }
  0xcc   : > { %v138_v5 = vmax.f32 %v136_v3, %v137_v4 }
  0xce   : > { %v139_v6 = vrot.slane %v138_v5, 1 }
  0xd0   : > { %v140_v7 = vmax.f32 %v138_v5, %v139_v6 }
  0xd2   : > { %290 = vrcp.f32 %v140_v7  ;;  %v141_v11 = vmul.f32 0.0625, %v140_v7 }
  0xdc   : > { %v291_v8 = vpop.eup %290 }
  0xdd   : > { %v143_v9 = vmul.f32 %v291_v8, %v132_v0 }
  0xdf   : > { %v144_v10 = vmul.f32 16.0, %v143_v9 }
  0xe1   : > { %v145_v12 = vfloor.f32 %v144_v10 }
  0xe3   : > { %v146_v13 = vmul.f32 %v145_v12, %v141_v11 }
  0xe5   : > { %147 = vst [vmem:[%s131_s26] sm:$0xff] %v146_v13 }
  0xe6   : > { %335 = shalt.err (!%p332_p4)
}
  0xe7   : > { %s336_s5 = scalar_lea.hbm %s519_s29, 128  ;;  %s340_s14 = scalar_lea.hbm %s564_s1, 256 }
  0xe8   : > { %p337_p5 = scmp.ne.s32.totalorder %s519_s29, %s336_s5  ;;  %p341_p0 = scmp.lt.u32.totalorder %s519_s29, %s564_s1 }
  0xe9   : > { %p342_p1 = scmp.lt.u32.totalorder %s340_s14, %s336_s5  ;;  %p344_p6 = scmp.lt.u32.totalorder %s336_s5, %s519_s29 }
  0xea   : > { %p338_p8 = pnand %p337_p5, %p573_p11 }
  0xeb   : > { %p343_p3 = por %p342_p1, %p341_p0 }
  0xec   : > { %p339_p9 = pneg %p338_p8 }
  0xed   : > { %p345_p12 = por %p344_p6, %p343_p3 }
  0xef   : > { %p346_p13 = pnand %p345_p12, %p339_p9 }
  0xf1   : > { %349 = shalt.err (!%p346_p13)
}
  0xf2   : > { %246 = dma.vmem_to_hbm [thread:$0]  (%p573_p11), %s521_s17, 128, %s519_s29, %s149_s30  }
  0xf3 PF: > { %s174_s21 = sand.u32 1, %s376_s6   ;;  %p574_p7 = scmp.ne.s32.totalorder %s569_s19, 0 }
  0xf4   : > { %p575_p10 = scmp.ge.s32.totalorder %s388_s9, 2  ;;  %s175_s22 = scalar_lea.sflag [#allocation4], %s174_s21 }
  0xf6   : > { %p253_p2 = pnand %p575_p10, %p574_p7 }
  0xf8   : > { %371 = dma.done.wait (!%p253_p2), %s175_s22, 128  }
  0xf9   : > { %373 = vsyncadd (!%p253_p2), %s175_s22, 4294967168  ;;  %p14_p4 = scmp.ge.s32.totalorder %s427_s12, 4   ;;  %s576_s6 = smov %s380_s7 }
  0xfa   : > { %s577_s7 = smov %s384_s8  ;;  %s578_s8 = smov %s439_s15 }
  0xfb   : > { %s579_s9 = smov %s427_s12  ;;  %16 = sbr.rel (!%p14_p4) target bundleno = 5 (0x5), region = 69 }
 0x102   :  { %180 = vsyncpa [#allocation3], 1 }
 0x103   :  { %182 = vsyncpa [#allocation3 + $0x1], 1 }
 0x104   :  { %183 = vsyncpa [#allocation4], 1 }
 0x105   :  { %185 = vsyncpa [#allocation4 + $0x1], 1 }

</bundles_post_ra>
